<compile_context>
chip_gen: v6e
topology: v6e:2x2x1
jax: 0.10.0
libtpu: 0.0.40
codegen_flags: <defaults>
</compile_context>

<pallas_src>
from functools import partial

import jax
import jax.numpy as jnp
from jax.experimental import pallas as pl
from jax.experimental.pallas import tpu as pltpu

LANE = 128


def _round_up(n, m):
    return ((n + m - 1) // m) * m


# ----------------------------------------------------------------------------
# Kernel: one grid step == one RNN cell step; hidden carried in the resident
# padded output block (constant index_map across the T axis).
# ----------------------------------------------------------------------------
def rnn_seq_kernel(x_ref, h0_ref, wx_ref, wh_ref, b1_ref, w2_ref, b2_ref,
                   out_ref, hcarry_ref):
    t = pl.program_id(0)

    @pl.when(t == 0)
    def _():
        # Initialize the VMEM-resident hidden carry from the padded h0.
        hcarry_ref[...] = h0_ref[...]

    h_prev = hcarry_ref[...]                               # (B, Hp), lane-dense

    # Fused pre-activation: two accumulating MXU dots + pre-summed bias.
    pre = jnp.dot(x_ref[0], wx_ref[...],
                  preferred_element_type=jnp.float32)      # (B, Hp)
    pre = pre + jnp.dot(h_prev, wh_ref[...],
                        preferred_element_type=jnp.float32)
    pre = pre + b1_ref[...]

    h_new = jnp.tanh(pre)                                  # EUP transcendental, f32
    hcarry_ref[...] = h_new.astype(hcarry_ref.dtype)       # lane-dense (128) store

    # Output projection on the fresh hidden state (padded rows of w2 are zero).
    o = jnp.dot(h_new.astype(w2_ref.dtype), w2_ref[...],
                preferred_element_type=jnp.float32) + b2_ref[...]
    out_ref[0] = o.astype(out_ref.dtype)                   # lane-dense (128) store


# ----------------------------------------------------------------------------
# One-time parameter preparation (hoisted out of the hot path)
# ----------------------------------------------------------------------------
def prepare_params(params, dtype=jnp.float32):
    """PyTorch-convention (out, in) params -> transposed, lane-padded arrays.

    Returns (wx, wh, b1, w2, b2):
      wx: (E, Hp)  = W_ih^T, columns padded to Hp
      wh: (Hp, Hp) = W_hh^T, rows+cols padded (padded rows/cols are zero)
      b1: (1, Hp)  = b_ih + b_hh, padded
      w2: (Hp, Ip) = W_ho^T, padded
      b2: (1, Ip)  = b_ho, padded
    """
    w_ih, b_ih, w_hh, b_hh, w_ho, b_ho = params
    H, E = w_ih.shape
    I = w_ho.shape[0]
    Hp = _round_up(H, LANE)
    Ip = _round_up(I, LANE)

    wx = jnp.zeros((E, Hp), dtype).at[:, :H].set(w_ih.T.astype(dtype))
    wh = jnp.zeros((Hp, Hp), dtype).at[:H, :H].set(w_hh.T.astype(dtype))
    b1 = jnp.zeros((1, Hp), dtype).at[0, :H].set((b_ih + b_hh).astype(dtype))
    w2 = jnp.zeros((Hp, Ip), dtype).at[:H, :I].set(w_ho.T.astype(dtype))
    b2 = jnp.zeros((1, Ip), dtype).at[0, :I].set(b_ho.astype(dtype))
    return wx, wh, b1, w2, b2


# ----------------------------------------------------------------------------
# Sequence wrapper: applies the cell over T steps inside ONE pallas_call.
# ----------------------------------------------------------------------------
@partial(jax.jit, static_argnames=("hidden_size", "input_size"))
def rnn_scratch_sequence(xs, h0, wx, wh, b1, w2, b2, *, hidden_size, input_size):
    """xs: (T, B, E), h0: (B, H) -> (outs: (T, B, I), h_last: (B, H))."""
    T, B, E = xs.shape
    Hp = wh.shape[0]
    Ip = w2.shape[1]
    dt = xs.dtype

    # One-time pad of the initial hidden state to its lane-dense carry form
    # (fuses under jit; state stays padded for the whole sequence).
    h0p = jnp.zeros((B, Hp), dt).at[:, :hidden_size].set(h0.astype(dt))

    itemsize = jnp.dtype(dt).itemsize
    flops = int(T * (2 * B * E * Hp + 2 * B * Hp * Hp + 2 * B * Hp * Ip))
    bytes_accessed = int(itemsize * (xs.size + h0p.size + wx.size + wh.size
                                     + b1.size + w2.size + b2.size
                                     + T * B * Ip + B * Hp))

    outs_p, hlast_p = pl.pallas_call(
        rnn_seq_kernel,
        out_shape=(
            jax.ShapeDtypeStruct((T, B, Ip), dt),   # padded, lane-dense outputs
            jax.ShapeDtypeStruct((B, Hp), dt),      # padded final hidden state
        ),
        grid_spec=pltpu.PrefetchScalarGridSpec(
            num_scalar_prefetch=0,
            grid=(T,),
            in_specs=[
                pl.BlockSpec((1, B, E), lambda t: (t, 0, 0)),   # x_t
                pl.BlockSpec((B, Hp), lambda t: (0, 0)),        # h0 (resident)
                pl.BlockSpec((E, Hp), lambda t: (0, 0)),        # wx (resident)
                pl.BlockSpec((Hp, Hp), lambda t: (0, 0)),       # wh (resident)
                pl.BlockSpec((1, Hp), lambda t: (0, 0)),        # b1 (resident)
                pl.BlockSpec((Hp, Ip), lambda t: (0, 0)),       # w2 (resident)
                pl.BlockSpec((1, Ip), lambda t: (0, 0)),        # b2 (resident)
            ],
            out_specs=(
                pl.BlockSpec((1, B, Ip), lambda t: (t, 0, 0)),  # out_t
                pl.BlockSpec((B, Hp), lambda t: (0, 0)),        # hidden carry
            ),
        ),
        compiler_params=pltpu.CompilerParams(
            dimension_semantics=("arbitrary",)),    # h is a loop carry over T
        cost_estimate=pl.CostEstimate(
            flops=flops, transcendentals=int(T * B * Hp),
            bytes_accessed=bytes_accessed),
    )(xs, h0p, wx, wh, b1, w2, b2)

    # Slice back to the module's exact shapes exactly once (fuses under jit).
    return outs_p[..., :input_size], hlast_p[:, :hidden_size]


# ----------------------------------------------------------------------------
# Single-step forward, matching the PyTorch module's forward(x, h_prev).
# ----------------------------------------------------------------------------
def rnn_scratch_forward(x, h_prev, wx, wh, b1, w2, b2, *, hidden_size, input_size):
    """x: (B, E), h_prev: (B, H) -> (out: (B, I), h_new: (B, H))."""
    outs, h_new = rnn_scratch_sequence(x[None], h_prev, wx, wh, b1, w2, b2,
                                       hidden_size=hidden_size,
                                       input_size=input_size)
    return outs[0], h_new


# ----------------------------------------------------------------------------
# Initialization matching PyTorch nn.Linear defaults
# ----------------------------------------------------------------------------
def init_params(key, input_size, embedding_size, hidden_size, dtype=jnp.float32):
    def linear_init(kw, kb, out_f, in_f):
        bound = 1.0 / (in_f ** 0.5)
        w = jax.random.uniform(kw, (out_f, in_f), dtype, minval=-bound, maxval=bound)
        b = jax.random.uniform(kb, (out_f,), dtype, minval=-bound, maxval=bound)
        return w, b

    ks = jax.random.split(key, 6)
    w_ih, b_ih = linear_init(ks[0], ks[1], hidden_size, embedding_size)
    w_hh, b_hh = linear_init(ks[2], ks[3], hidden_size, hidden_size)
    w_ho, b_ho = linear_init(ks[4], ks[5], input_size, hidden_size)
    return (w_ih, b_ih, w_hh, b_hh, w_ho, b_ho)


def init_hidden(key, batch_size, hidden_size, dtype=jnp.float32):
    # ~ nn.init.kaiming_uniform_ on (batch, hidden): bound = sqrt(6 / fan_in)
    bound = (6.0 / hidden_size) ** 0.5
    return jax.random.uniform(key, (batch_size, hidden_size), dtype,
                              minval=-bound, maxval=bound)


if __name__ == "__main__":
    # Small shapes implied by the module: batch=8, embedding=32, hidden=32,
    # vocab=16, sequence length 12 for the in-kernel time loop.
    B, E, H, I, T = 8, 32, 32, 16, 12
    key = jax.random.PRNGKey(0)
    k_x, k_h, k_p = jax.random.split(key, 3)

    xs = jax.random.normal(k_x, (T, B, E), dtype=jnp.float32)
    h0 = init_hidden(k_h, B, H)
    raw_params = init_params(k_p, input_size=I, embedding_size=E, hidden_size=H)
    wx, wh, b1, w2, b2 = prepare_params(raw_params)       # one-time prep (hoisted)

    # Full sequence in one kernel launch.
    outs, h_last = rnn_scratch_sequence(xs, h0, wx, wh, b1, w2, b2,
                                        hidden_size=H, input_size=I)
    # Single-step call (module semantics).
    out0, h1 = rnn_scratch_forward(xs[0], h0, wx, wh, b1, w2, b2,
                                   hidden_size=H, input_size=I)
    jax.block_until_ready((outs, h_last, out0, h1))

    # Pure-JAX reference (PyTorch-convention params, step-by-step).
    w_ih, b_ih, w_hh, b_hh, w_ho, b_ho = raw_params
    h = h0
    hs_ref, outs_ref = [], []
    for t in range(T):
        h = jnp.tanh(xs[t] @ w_ih.T + b_ih + h @ w_hh.T + b_hh)
        hs_ref.append(h)
        outs_ref.append(h @ w_ho.T + b_ho)
    outs_ref = jnp.stack(outs_ref)

    assert outs.shape == (T, B, I) and h_last.shape == (B, H)
    assert out0.shape == (B, I) and h1.shape == (B, H)
    assert jnp.allclose(outs, outs_ref, atol=1e-5, rtol=1e-5)
    assert jnp.allclose(h_last, hs_ref[-1], atol=1e-5, rtol=1e-5)
    assert jnp.allclose(out0, outs_ref[0], atol=1e-5, rtol=1e-5)
    assert jnp.allclose(h1, hs_ref[0], atol=1e-5, rtol=1e-5)

    print("KERNEL_OK")
</pallas_src>

<mosaic_0001>
module attributes {stable_mosaic.version = 11 : i64} {
  func.func @rnn_seq_kernel(%arg0: i32, %arg1: memref<1x8x32xf32, #tpu.memory_space<vmem>>, %arg2: memref<8x128xf32, #tpu.memory_space<vmem>>, %arg3: memref<32x128xf32, #tpu.memory_space<vmem>>, %arg4: memref<128x128xf32, #tpu.memory_space<vmem>>, %arg5: memref<1x128xf32, #tpu.memory_space<vmem>>, %arg6: memref<128x128xf32, #tpu.memory_space<vmem>>, %arg7: memref<1x128xf32, #tpu.memory_space<vmem>>, %arg8: memref<1x8x128xf32, #tpu.memory_space<vmem>>, %arg9: memref<8x128xf32, #tpu.memory_space<vmem>>) attributes {dimension_semantics = [#tpu.dimension_semantics<arbitrary>], iteration_bounds = array<i64: 12>, scalar_prefetch = 0 : i64, scratch_operands = 0 : i64, tpu.core_type = #tpu.core_type<tc>, window_params = [{transform_indices = @transform_0, window_bounds = array<i64: 1, 8, 32>}, {pipeline_mode = #tpu.pipeline_mode<synchronous>, transform_indices = @transform_1, window_bounds = array<i64: 8, 128>}, {pipeline_mode = #tpu.pipeline_mode<synchronous>, transform_indices = @transform_2, window_bounds = array<i64: 32, 128>}, {pipeline_mode = #tpu.pipeline_mode<synchronous>, transform_indices = @transform_3, window_bounds = array<i64: 128, 128>}, {pipeline_mode = #tpu.pipeline_mode<synchronous>, transform_indices = @transform_4, window_bounds = array<i64: 1, 128>}, {pipeline_mode = #tpu.pipeline_mode<synchronous>, transform_indices = @transform_5, window_bounds = array<i64: 128, 128>}, {pipeline_mode = #tpu.pipeline_mode<synchronous>, transform_indices = @transform_6, window_bounds = array<i64: 1, 128>}, {transform_indices = @transform_7, window_bounds = array<i64: 1, 8, 128>}, {pipeline_mode = #tpu.pipeline_mode<synchronous>, transform_indices = @transform_8, window_bounds = array<i64: 8, 128>}]} {
    %c0_i32 = arith.constant 0 : i32
    %0 = arith.cmpi eq, %arg0, %c0_i32 : i32
    %1 = arith.extui %0 : i1 to i32
    %c0_i32_0 = arith.constant 0 : i32
    %2 = arith.cmpi ne, %1, %c0_i32_0 : i32
    scf.if %2 {
      %c0_22 = arith.constant 0 : index
      %c0_23 = arith.constant 0 : index
      %24 = vector.load %arg2[%c0_22, %c0_23] : memref<8x128xf32, #tpu.memory_space<vmem>>, vector<8x128xf32>
      %c0_24 = arith.constant 0 : index
      %c0_25 = arith.constant 0 : index
      %25 = vector.load %arg9[%c0_24, %c0_25] : memref<8x128xf32, #tpu.memory_space<vmem>>, vector<8x128xf32>
      tpu.vector_store %arg9[%c0_24, %c0_25], %24 {strides = array<i32>} : memref<8x128xf32, #tpu.memory_space<vmem>>, vector<8x128xf32>,
    } else {
    }
    %c0 = arith.constant 0 : index
    %c0_1 = arith.constant 0 : index
    %3 = vector.load %arg9[%c0, %c0_1] : memref<8x128xf32, #tpu.memory_space<vmem>>, vector<8x128xf32>
    %c0_2 = arith.constant 0 : index
    %c0_3 = arith.constant 0 : index
    %c0_4 = arith.constant 0 : index
    %4 = vector.load %arg1[%c0_2, %c0_3, %c0_4] : memref<1x8x32xf32, #tpu.memory_space<vmem>>, vector<1x8x32xf32>
    %5 = vector.shape_cast %4 : vector<1x8x32xf32> to vector<8x32xf32>
    %c0_5 = arith.constant 0 : index
    %c0_6 = arith.constant 0 : index
    %6 = vector.load %arg3[%c0_5, %c0_6] : memref<32x128xf32, #tpu.memory_space<vmem>>, vector<32x128xf32>
    %cst = arith.constant dense<0.000000e+00> : vector<8x128xf32>
    %7 = tpu.matmul %5, %6, %cst {dimension_numbers = #tpu.dot_dimension_numbers<[1], [0], [0], [1], [0, 0, 1, 1], [], []>} : vector<8x32xf32>, vector<32x128xf32>, vector<8x128xf32> -> vector<8x128xf32>
    %c0_7 = arith.constant 0 : index
    %c0_8 = arith.constant 0 : index
    %8 = vector.load %arg4[%c0_7, %c0_8] : memref<128x128xf32, #tpu.memory_space<vmem>>, vector<128x128xf32>
    %cst_9 = arith.constant dense<0.000000e+00> : vector<8x128xf32>
    %9 = tpu.matmul %3, %8, %cst_9 {dimension_numbers = #tpu.dot_dimension_numbers<[1], [0], [0], [1], [0, 0, 1, 1], [], []>} : vector<8x128xf32>, vector<128x128xf32>, vector<8x128xf32> -> vector<8x128xf32>
    %10 = arith.addf %7, %9 : vector<8x128xf32>
    %c0_10 = arith.constant 0 : index
    %c0_11 = arith.constant 0 : index
    %11 = vector.load %arg5[%c0_10, %c0_11] : memref<1x128xf32, #tpu.memory_space<vmem>>, vector<1x128xf32>
    %12 = vector.broadcast %11 : vector<1x128xf32> to vector<8x128xf32>
    %13 = arith.addf %10, %12 : vector<8x128xf32>
    %14 = math.tanh %13 : vector<8x128xf32>
    %c0_12 = arith.constant 0 : index
    %c0_13 = arith.constant 0 : index
    %15 = vector.load %arg9[%c0_12, %c0_13] : memref<8x128xf32, #tpu.memory_space<vmem>>, vector<8x128xf32>
    tpu.vector_store %arg9[%c0_12, %c0_13], %14 {strides = array<i32>} : memref<8x128xf32, #tpu.memory_space<vmem>>, vector<8x128xf32>,
    %c0_14 = arith.constant 0 : index
    %c0_15 = arith.constant 0 : index
    %16 = vector.load %arg6[%c0_14, %c0_15] : memref<128x128xf32, #tpu.memory_space<vmem>>, vector<128x128xf32>
    %cst_16 = arith.constant dense<0.000000e+00> : vector<8x128xf32>
    %17 = tpu.matmul %14, %16, %cst_16 {dimension_numbers = #tpu.dot_dimension_numbers<[1], [0], [0], [1], [0, 0, 1, 1], [], []>} : vector<8x128xf32>, vector<128x128xf32>, vector<8x128xf32> -> vector<8x128xf32>
    %c0_17 = arith.constant 0 : index
    %c0_18 = arith.constant 0 : index
    %18 = vector.load %arg7[%c0_17, %c0_18] : memref<1x128xf32, #tpu.memory_space<vmem>>, vector<1x128xf32>
    %19 = vector.broadcast %18 : vector<1x128xf32> to vector<8x128xf32>
    %20 = arith.addf %17, %19 : vector<8x128xf32>
    %c0_19 = arith.constant 0 : index
    %c0_20 = arith.constant 0 : index
    %c0_21 = arith.constant 0 : index
    %21 = vector.load %arg8[%c0_19, %c0_20, %c0_21] : memref<1x8x128xf32, #tpu.memory_space<vmem>>, vector<1x8x128xf32>
    %22 = vector.shape_cast %21 : vector<1x8x128xf32> to vector<8x128xf32>
    %23 = vector.shape_cast %20 : vector<8x128xf32> to vector<1x8x128xf32>
    tpu.vector_store %arg8[%c0_19, %c0_20, %c0_21], %23 {strides = array<i32>} : memref<1x8x128xf32, #tpu.memory_space<vmem>>, vector<1x8x128xf32>,
    return
  }
  func.func @transform_0(%arg0: i32) -> (i32, i32, i32) {
    %c0_i32 = arith.constant 0 : i32
    %c0_i32_0 = arith.constant 0 : i32
    %c0_i32_1 = arith.constant 0 : i32
    return %arg0, %c0_i32, %c0_i32_0 : i32, i32, i32
  }
  func.func @transform_1(%arg0: i32) -> (i32, i32) {
    %c0_i32 = arith.constant 0 : i32
    %c0_i32_0 = arith.constant 0 : i32
    %c0_i32_1 = arith.constant 0 : i32
    return %c0_i32, %c0_i32_0 : i32, i32
  }
  func.func @transform_2(%arg0: i32) -> (i32, i32) {
    %c0_i32 = arith.constant 0 : i32
    %c0_i32_0 = arith.constant 0 : i32
    %c0_i32_1 = arith.constant 0 : i32
    return %c0_i32, %c0_i32_0 : i32, i32
  }
  func.func @transform_3(%arg0: i32) -> (i32, i32) {
    %c0_i32 = arith.constant 0 : i32
    %c0_i32_0 = arith.constant 0 : i32
    %c0_i32_1 = arith.constant 0 : i32
    return %c0_i32, %c0_i32_0 : i32, i32
  }
  func.func @transform_4(%arg0: i32) -> (i32, i32) {
    %c0_i32 = arith.constant 0 : i32
    %c0_i32_0 = arith.constant 0 : i32
    %c0_i32_1 = arith.constant 0 : i32
    return %c0_i32, %c0_i32_0 : i32, i32
  }
  func.func @transform_5(%arg0: i32) -> (i32, i32) {
    %c0_i32 = arith.constant 0 : i32
    %c0_i32_0 = arith.constant 0 : i32
    %c0_i32_1 = arith.constant 0 : i32
    return %c0_i32, %c0_i32_0 : i32, i32
  }
  func.func @transform_6(%arg0: i32) -> (i32, i32) {
    %c0_i32 = arith.constant 0 : i32
    %c0_i32_0 = arith.constant 0 : i32
    %c0_i32_1 = arith.constant 0 : i32
    return %c0_i32, %c0_i32_0 : i32, i32
  }
  func.func @transform_7(%arg0: i32) -> (i32, i32, i32) {
    %c0_i32 = arith.constant 0 : i32
    %c0_i32_0 = arith.constant 0 : i32
    %c0_i32_1 = arith.constant 0 : i32
    return %arg0, %c0_i32, %c0_i32_0 : i32, i32, i32
  }
  func.func @transform_8(%arg0: i32) -> (i32, i32) {
    %c0_i32 = arith.constant 0 : i32
    %c0_i32_0 = arith.constant 0 : i32
    %c0_i32_1 = arith.constant 0 : i32
    return %c0_i32, %c0_i32_0 : i32, i32
  }
}

</mosaic_0001>

<bundles_post_ra>
// kernel: rnn_scratch_sequence.1
= control target key start
LH: loop header
LB: loop body
LE: loop exit
PB: predicated region body
PF: predicated region fallthrough
CT: control target
= control target key end

     0   :  { %s1457_s0 = inlined_call_operand.hbm [shape: f32[12,8,32], index: 0, kind: input, shape index: {}]   ;;  %s1458_s1 = inlined_call_operand.vmem [shape: f32[8,128], index: 1, kind: input, shape index: {}]   ;;  %s1459_s2 = inlined_call_operand.vmem [shape: f32[32,128], index: 2, kind: input, shape index: {}]   ;;  %s1460_s3 = inlined_call_operand.hbm [shape: f32[128,128], index: 3, kind: input, shape index: {}]   ;;  %s1461_s4 = inlined_call_operand.vmem [shape: f32[1,128], index: 4, kind: input, shape index: {}]   ;;  %s1462_s5 = inlined_call_operand.hbm [shape: f32[128,128], index: 5, kind: input, shape index: {}]   ;;  %s1463_s6 = inlined_call_operand.vmem [shape: f32[1,128], index: 6, kind: input, shape index: {}]   ;;  %s1464_s7 = inlined_call_operand.hbm [shape: f32[12,8,128], index: 7, kind: output, shape index: {0}]   ;;  %s1465_s8 = inlined_call_operand.hbm [shape: f32[8,128], index: 8, kind: output, shape index: {1}]  }
   0x1   :  { %1470 = sst [smem:[#allocation16_spill]] %s1460_s3 }
   0x2   :  { %1471 = sst [smem:[#allocation17_spill]] %s1462_s5 }
   0x3   :  { %14 = vsyncpa [#allocation3], 0 }
   0x4   :  { %16 = vsyncpa [#allocation3 + $0x1], 0 }
   0x5   :  { %17 = vsyncpa [#allocation6], 0 }
   0x6   :  { %18 = vsyncpa [#allocation4], 0 }
   0x7   :  { %20 = vsyncpa [#allocation4 + $0x1], 0 }
   0x8   :  { %21 = vsyncpa [#allocation10], 0  ;;  %s1204_s27 = smov 0   ;;  %s1206_s28 = smov 0  }
   0x9   :  { %s1208_s29 = smov 0   ;;  %s1210_s30 = smov 0  }
   0xa LB: > { %s1225_s9 = sadd.s32 4294967295, %s1148_s30   ;;  %s750_s10 = sadd.s32 4294967294, %s1148_s30   ;;  %s1148_s30 = sphi %s1210_s30, %s1497_s30   ;;  %s1144_s29 = sphi %s1208_s29, %s1496_s29   ;;  %s1140_s28 = sphi %s1206_s28, %s1495_s28   ;;  %s1136_s27 = sphi %s1204_s27, %s1494_s27  }
   0xb   : > { %p47_p0 = scmp.ne.s32.totalorder %s1140_s28, %s1136_s27  ;;  %p1466_p1 = scmp.eq.s32.totalorder %s1225_s9, 0 }
   0xc   : > { %p203_p3 = scmp.eq.s32.totalorder %s750_s10, 11  ;;  %p751_p5 = scmp.ge.s32.totalorder %s1148_s30, 1 }
   0xd   : > { %p1234_p4 = por %p1466_p1, %p47_p0  ;;  %p231_p7 = scmp.lt.s32.totalorder %s1148_s30, 13 }
   0xe   : > { %p1239_p6 = por %p203_p3, %p47_p0  ;;  %s1150_s14 = smov [#allocation5]  }
   0xf   : > { %s1472_s11 = scalar_select %p1234_p4, 1, 0 }
  0x10   : > { %s1473_s12 = scalar_select %p1239_p6, 1, 0 }
  0x11   : > { %p1245_p9 = pnand %p751_p5, %p231_p7  ;;  %s249_s15 = sshll.u32 %s1150_s14, 4  ;;  %s250_s15 = int_to_ptr.vmem [resolvable:$true] %s249_s15 }
  0x12   : > { %s1151_s17 = smov [#allocation7]   ;;  %s983_s19 = scalar_lea.vmem %s250_s15, 2048 }
  0x13   : > { %s1474_s13 = scalar_select %p1245_p9, 1, 0 }
  0x14   : > { %p908_p10 = pneg %p1245_p9  ;;  %s265_s18 = sshll.u32 %s1151_s17, 4  ;;  %s266_s18 = int_to_ptr.vmem [resolvable:$true] %s265_s18 }
  0x15   : > { %p984_p13 = scmp.ne.s32.totalorder %s250_s15, %s983_s19  ;;  %p991_p5 = scmp.lt.s32.totalorder %s250_s15, %s250_s15 }
  0x16   : > { %p1253_p11 = pnand %p908_p10, %p1466_p1  ;;  %p992_p7 = scmp.lt.s32.totalorder %s983_s19, %s983_s19 }
  0x18   : > { %p974_p12 = pneg %p1253_p11  ;;  %p993_p8 = por %p992_p7, %p991_p5 }
  0x1a   : > { %p986_p0 = pnand %p984_p13, %p974_p12 }
  0x1c   : > { %p987_p3 = pneg %p986_p0 }
  0x1e   : > { %p994_p10 = pnand %p993_p8, %p987_p3 }
  0x20   : > { %997 = shalt.err (!%p994_p10)
}
  0x21   : > { %s1152_s20 = smov 128   ;;  %s1153_s21 = smov 8  }
  0x22   : > { %s1476_s3 = sld [smem:[#allocation16_spill]]  ;;  %s1009_s24 = scalar_lea.vmem %s266_s18, 2048 }
  0x23   : > { %p1010_p1 = scmp.ne.s32.totalorder %s266_s18, %s1009_s24  ;;  %p1017_p2 = scmp.lt.s32.totalorder %s266_s18, %s266_s18 }
  0x24   : > { %p1018_p6 = scmp.lt.s32.totalorder %s1009_s24, %s1009_s24 }
  0x25   : > { %p1012_p13 = pnand %p1010_p1, %p974_p12 }
  0x26   : > { %p1019_p5 = por %p1018_p6, %p1017_p2 }
  0x27   : > { %p1013_p0 = pneg %p1012_p13 }
  0x28   : > { %911 = dma.hbm_to_vmem [thread:$0]  (!%p1253_p11), %s1476_s3, 2048, %s250_s15, [#allocation6], %s1152_s20, %s1152_s20, %s1153_s21  }
  0x29   : > { %p1020_p8 = pnand %p1019_p5, %p1013_p0 }
  0x2b   : > { %1023 = shalt.err (!%p1020_p8)
}
  0x2c   : > { %s1477_s5 = sld [smem:[#allocation17_spill]]  ;;  %s1276_s10 = sadd.s32 1, %s1148_s30  }
  0x2d   : > { %s34_s14 = sadd.s32 1, %s1144_s29  ;;  %s31_s15 = ssub.s32 %s1148_s30, %s1276_s10 }
  0x2e   : > { %p41_p1 = scmp.ne.s32.totalorder %s1144_s29, %s1140_s28  ;;  %p32_p2 = scmp.eq.s32.totalorder %s31_s15, 0 }
  0x2f   : > { %p42_p6 = scmp.eq.s32.totalorder %s1148_s30, 0  ;;  %p1478_p12 = scmp.eq.s32.totalorder %s1225_s9, 11 }
  0x30   : > { %p925_p7 = scmp.lt.s32.totalorder %s1148_s30, 12  ;;  %s282_s19 = sand.u32 1, %s1144_s29  }
  0x31   : > { %p1286_p3 = por %p1478_p12, %p41_p1  ;;  %p43_p10 = por %p42_p6, %p41_p1 }
  0x32   : > { %914 = dma.hbm_to_vmem [thread:$0]  (!%p1253_p11), %s1477_s5, 2048, %s266_s18, [#allocation6], %s1152_s20, %s1152_s20, %s1153_s21  }
  0x33   : > { %s1479_s16 = scalar_select %p1286_p3, 1, 0 }
  0x34   : > { %s1292_s17 = scalar_select %p32_p2, %s1144_s29, %s34_s14  }
  0x35   : > { %s755_s22 = sshll.u32 %s282_s19, 3  ;;  %s756_s18 = sshll.u32 %s1148_s30, 7 }
  0x36   : > { %1480 = sst [smem:[#allocation15_spill]] %s1292_s17  ;;  %s1299_s23 = scalar_lea.hbm %s1457_s0, %s756_s18 }
  0x37   : > { %s286_s24 = scalar_lea.vmem [#allocation2], %s755_s22  ;;  %p1301_p11 = pnand %p925_p7, %p43_p10 }
  0x38   : > { %s293_s25 = sshll.u32 %s286_s24, 4  ;;  %s283_s14 = scalar_lea.sflag [#allocation3], %s282_s19  ;;  %s294_s25 = int_to_ptr.vmem [resolvable:$true] %s293_s25 }
  0x39   : > { %s1024_s15 = scalar_lea.hbm %s1299_s23, 128  ;;  %p1026_p0 = pneg %p1301_p11 }
  0x3a   : > { %p1025_p13 = scmp.ne.s32.totalorder %s1299_s23, %s1024_s15  ;;  %s1029_s21 = scalar_lea.hbm %s1457_s0, 1536 }
  0x3b   : > { %p1030_p1 = scmp.lt.s32.totalorder %s1299_s23, %s1457_s0  ;;  %p1031_p2 = scmp.lt.s32.totalorder %s1029_s21, %s1024_s15 }
  0x3c   : > { %p1027_p5 = pnand %p1026_p0, %p1025_p13 }
  0x3d   : > { %p1032_p6 = por %p1031_p2, %p1030_p1 }
  0x3e   : > { %p1028_p8 = pneg %p1027_p5 }
  0x40   : > { %p1033_p12 = pnand %p1032_p6, %p1028_p8 }
  0x42   : > { %1036 = shalt.err (!%p1033_p12)
}
  0x43   : > { %s1037_s24 = scalar_lea.vmem %s294_s25, 128  ;;  %s1154_s19 = smov [#allocation2]  }
  0x44   : > { %p1038_p7 = scmp.ne.s32.totalorder %s294_s25, %s1037_s24  ;;  %s1042_s5 = sshll.u32 %s1154_s19, 4  ;;  %s1043_s5 = int_to_ptr.vmem [resolvable:$false] %s1042_s5 }
  0x45   : > { %s1044_s17 = scalar_lea.vmem %s1043_s5, 256  ;;  %p1045_p13 = scmp.lt.s32.totalorder %s294_s25, %s1043_s5 }
  0x46   : > { %p1040_p10 = pnand %p1038_p7, %p1026_p0  ;;  %p1046_p5 = scmp.lt.s32.totalorder %s1044_s17, %s1037_s24 }
  0x48   : > { %p1041_p3 = pneg %p1040_p10  ;;  %p1047_p4 = por %p1046_p5, %p1045_p13 }
  0x4a   : > { %p1048_p9 = pnand %p1047_p4, %p1041_p3 }
  0x4c   : > { %1051 = shalt.err (!%p1048_p9)
}
  0x4d   : > { %918 = dma.hbm_to_vmem [thread:$0]  (!%p1301_p11), %s1299_s23, 128, %s294_s25, %s283_s14  }
  0x4e   : > { %p1482_p8 = scmp.ne.s32.totalorder %s1474_s13, 0 }
  0x4f   : > { %s1322_s3 = sand.u32 (!%p1482_p8), 1, %s1140_s28   ;;  %p1483_p0 = scmp.ne.s32.totalorder (!%p1482_p8), %s1472_s11, 0 }
  0x50   : > { %302 = sbr.rel (%p1482_p8) target bundleno = 555 (0x22b), region = 48  ;;  %s758_s15 = sshll.u32 (!%p1482_p8), %s1322_s3, 3 }
  0x51   : > { %s305_s18 = scalar_lea.sflag (!%p1482_p8), [#allocation3], %s1322_s3  ;;  %s1326_s5 = scalar_lea.vmem (!%p1482_p8), [#allocation2], %s758_s15 }
  0x55   : > { %1119 = dma.done.wait (%p1483_p0), %s305_s18, 128  }
  0x56   : > { %1121 = vsyncadd (%p1483_p0), %s305_s18, 4294967168  ;;  %p1484_p4 = scmp.eq.s32.totalorder %s1225_s9, 0 }
  0x58   : > { %1123 = dma.done.wait (%p1484_p4), [#allocation6], 4096   ;;  %p1485_p9 = pmov %p1484_p4 }
  0x59   : > { %s1336_s13 = scalar_lea.vmem [#allocation8], %s758_s15  ;;  %p1486_p3 = scmp.ne.s32.totalorder %s1225_s9, 0 }
  0x5a   : > { %1125 = vsyncadd (%p1485_p9), [#allocation6], 4294963200 }
  0x5b   : > { %352 = sbr.rel (%p1486_p3) target bundleno = 98 (0x62), region = 64 }
  0x60   : > { %v353_v0 = vld [vmem:[%s1458_s1] sm:$0xff] }
  0x61   : > { %354 = vst [vmem:[#allocation9] sm:$0xff] %v353_v0 }
  0x62 PF: > { %v376_v1 = vld [vmem:[#allocation5 + $0x78] sm:$0xff]  ;;  %v1155_v2 = vmov 0.0   ;;  %v375_v3 = vld [vmem:[#allocation5 + $0x70] sm:$0xff]  ;;  %vm1156_vm0 = vmmov 0   ;;  %v374_v4 = vld [vmem:[#allocation5 + $0x68] sm:$0xff]  ;;  %vm447_vm1 = vcmask 261120  }
  0x63   : > { %811 = vmatprep.subr.mxu0 %v1155_v2  ;;  %846 = vmatprep.subr.mxu1 %v1155_v2  ;;  %v360_v5 = vld [vmem:[%s1459_s2 + $0x18] sm:$0xff]  ;;  %v359_v6 = vld [vmem:[%s1459_s2 + $0x10] sm:$0xff]  ;;  %v358_v8 = vld [vmem:[%s1459_s2 + $0x8] sm:$0xff]  ;;  %s1157_s18 = smov [#allocation9]   ;;  %p1487_p1 = scmp.eq.s32.totalorder %s1225_s9, 11 }
  0x64   : > { %812 = vmatpush3.msra.mxu0 %v376_v1  ;;  %854 = vmatprep.mubr.msk.f32.mxu1 %vm1156_vm0, %v1155_v2  ;;  %v373_v7 = vld [vmem:[#allocation5 + $0x60] sm:$0xff]  ;;  %v372_v9 = vld [vmem:[#allocation5 + $0x58] sm:$0xff]  ;;  %v357_v10 = vld [vmem:[%s1459_s2] sm:$0xff] }
  0x65   : > { %813 = vmatprep.subr.mxu0 %v1155_v2  ;;  %843 = vmatprep.mubr.msk.f32.mxu0 %vm1156_vm0, %v1155_v2  ;;  %v371_v11 = vld [vmem:[#allocation5 + $0x50] sm:$0xff]  ;;  %v370_v13 = vld [vmem:[#allocation5 + $0x48] sm:$0xff]  ;;  %v546_v14 = vld [vmem:[#allocation7 + $0x78] sm:$0xff] }
  0x66   : > { %814 = vmatpush3.msra.mxu0 %v375_v3  ;;  %847 = vmatpush3.msra.mxu1 %v360_v5  ;;  %v356_v12 = vld [vmem:[%s1326_s5] sm:$0xff]  ;;  %v369_v15 = vld [vmem:[#allocation5 + $0x40] sm:$0xff]  ;;  %v544_v18 = vld [vmem:[#allocation7 + $0x68] sm:$0xff]  ;;  %s650_s5 = sshll.u32 %s1157_s18, 4  ;;  %s651_s5 = int_to_ptr.vmem [resolvable:$true] %s650_s5 }
  0x67   : > { %815 = vmatprep.subr.mxu0 %v1155_v2  ;;  %848 = vmatprep.subr.mxu1 %v1155_v2  ;;  %v545_v16 = vld [vmem:[#allocation7 + $0x70] sm:$0xff]  ;;  %v368_v17 = vld [vmem:[#allocation5 + $0x38] sm:$0xff]  ;;  %v543_v20 = vld [vmem:[#allocation7 + $0x60] sm:$0xff]  ;;  %s1052_s17 = scalar_lea.vmem %s651_s5, 128  ;;  %p1059_p12 = scmp.lt.s32.totalorder %s651_s5, %s651_s5 }
  0x68   : > { %816 = vmatpush3.msra.mxu0 %v374_v4  ;;  %849 = vmatpush3.msra.mxu1 %v359_v6  ;;  %v367_v19 = vld [vmem:[#allocation5 + $0x30] sm:$0xff]  ;;  %v366_v21 = vld [vmem:[#allocation5 + $0x28] sm:$0xff]  ;;  %v542_v22 = vld [vmem:[#allocation7 + $0x58] sm:$0xff]  ;;  %p1053_p11 = scmp.ne.s32.totalorder %s651_s5, %s1052_s17  ;;  %p1060_p7 = scmp.lt.s32.totalorder %s1052_s17, %s1052_s17 }
  0x69   : > { %817 = vmatprep.subr.mxu0 %v1155_v2  ;;  %850 = vmatprep.subr.mxu1 %v1155_v2  ;;  %v365_v23 = vld [vmem:[#allocation5 + $0x20] sm:$0xff]  ;;  %v364_v24 = vld [vmem:[#allocation5 + $0x18] sm:$0xff]  ;;  %v363_v25 = vld [vmem:[#allocation5 + $0x10] sm:$0xff] }
  0x6a   : > { %818 = vmatpush3.msra.mxu0 %v373_v7  ;;  %851 = vmatpush3.msra.mxu1 %v358_v8  ;;  %v362_v26 = vld [vmem:[#allocation5 + $0x8] sm:$0xff]  ;;  %v361_v27 = vld [vmem:[#allocation5] sm:$0xff]  ;;  %v355_v28 = vld [vmem:[#allocation9] sm:$0xff]  ;;  %p1054_p2 = pnand %p1053_p11, %p1487_p1  ;;  %p1061_p10 = por %p1060_p7, %p1059_p12 }
  0x6b   : > { %819 = vmatprep.subr.mxu0 %v1155_v2  ;;  %852 = vmatprep.subr.mxu1 %v1155_v2  ;;  %v541_v29 = vld [vmem:[#allocation7 + $0x50] sm:$0xff]  ;;  %v540_v30 = vld [vmem:[#allocation7 + $0x48] sm:$0xff]  ;;  %v539_v31 = vld [vmem:[#allocation7 + $0x40] sm:$0xff] }
  0x6c   : > { %820 = vmatpush3.msra.mxu0 %v372_v9  ;;  %853 = vmatpush3.msra.mxu1 %v357_v10  ;;  %v538_v32 = vld [vmem:[#allocation7 + $0x38] sm:$0xff]  ;;  %v537_v33 = vld [vmem:[#allocation7 + $0x30] sm:$0xff]  ;;  %v536_v34 = vld [vmem:[#allocation7 + $0x28] sm:$0xff]  ;;  %p1055_p6 = pneg %p1054_p2 }
  0x6d   : > { %821 = vmatprep.subr.mxu0 %v1155_v2  ;;  %855 = vmatmul.mubr.msk.f32.vlgmr.msra.gmra.mxu1 %vm447_vm1, %v356_v12  ;;  %v535_v35 = vld [vmem:[#allocation7 + $0x20] sm:$0xff]  ;;  %v534_v36 = vld [vmem:[#allocation7 + $0x18] sm:$0xff]  ;;  %v533_v37 = vld [vmem:[#allocation7 + $0x10] sm:$0xff] }
  0x6e   : > { %822 = vmatpush3.msra.mxu0 %v371_v11  ;;  %857 = vmatprep.subr.mxu1 %v1155_v2  ;;  %v532_v38 = vld [vmem:[#allocation7 + $0x8] sm:$0xff]  ;;  %v531_v39 = vld [vmem:[#allocation7] sm:$0xff]  ;;  %v764_v43 = vld [vmem:[%s1461_s4] ss:$0 sm:$0xff]  ;;  %p1062_p13 = pnand %p1061_p10, %p1055_p6 }
  0x6f   : > { %823 = vmatprep.subr.mxu0 %v1155_v2  ;;  %858 = vmatpush3.msra.mxu1 %v546_v14 }
  0x70   : > { %824 = vmatpush3.msra.mxu0 %v370_v13  ;;  %859 = vmatprep.subr.mxu1 %v1155_v2 }
  0x71   : > { %825 = vmatprep.subr.mxu0 %v1155_v2  ;;  %860 = vmatpush3.msra.mxu1 %v545_v16 }
  0x72   : > { %826 = vmatpush3.msra.mxu0 %v369_v15  ;;  %861 = vmatprep.subr.mxu1 %v1155_v2 }
  0x73   : > { %827 = vmatprep.subr.mxu0 %v1155_v2  ;;  %862 = vmatpush3.msra.mxu1 %v544_v18 }
  0x74   : > { %828 = vmatpush3.msra.mxu0 %v368_v17  ;;  %863 = vmatprep.subr.mxu1 %v1155_v2 }
  0x75   : > { %829 = vmatprep.subr.mxu0 %v1155_v2  ;;  %864 = vmatpush3.msra.mxu1 %v543_v20 }
  0x76   : > { %830 = vmatpush3.msra.mxu0 %v367_v19  ;;  %865 = vmatprep.subr.mxu1 %v1155_v2 }
  0x77   : > { %831 = vmatprep.subr.mxu0 %v1155_v2  ;;  %866 = vmatpush3.msra.mxu1 %v542_v22 }
  0x78   : > { %832 = vmatpush3.msra.mxu0 %v366_v21  ;;  %867 = vmatprep.subr.mxu1 %v1155_v2 }
  0x79   : > { %833 = vmatprep.subr.mxu0 %v1155_v2  ;;  %889 = vmatprep.mubr.msk.f32.mxu1 %vm1156_vm0, %v1155_v2 }
  0x7a   : > { %834 = vmatpush3.msra.mxu0 %v365_v23  ;;  %868 = vmatpush3.msra.mxu1 %v541_v29 }
  0x7b   : > { %835 = vmatprep.subr.mxu0 %v1155_v2  ;;  %869 = vmatprep.subr.mxu1 %v1155_v2 }
  0x7c   : > { %836 = vmatpush3.msra.mxu0 %v364_v24  ;;  %870 = vmatpush3.msra.mxu1 %v540_v30 }
  0x7d   : > { %837 = vmatprep.subr.mxu0 %v1155_v2  ;;  %871 = vmatprep.subr.mxu1 %v1155_v2 }
  0x7e   : > { %838 = vmatpush3.msra.mxu0 %v363_v25  ;;  %872 = vmatpush3.msra.mxu1 %v539_v31 }
  0x7f   : > { %839 = vmatprep.subr.mxu0 %v1155_v2  ;;  %873 = vmatprep.subr.mxu1 %v1155_v2 }
  0x80   : > { %840 = vmatpush3.msra.mxu0 %v362_v26  ;;  %874 = vmatpush3.msra.mxu1 %v538_v32 }
  0x81   : > { %841 = vmatprep.subr.mxu0 %v1155_v2  ;;  %875 = vmatprep.subr.mxu1 %v1155_v2 }
  0x82   : > { %842 = vmatpush3.msra.mxu0 %v361_v27  ;;  %876 = vmatpush3.msra.mxu1 %v537_v33 }
  0x83   : > { %844 = vmatmul.mubr.f32.vlgmr.msra.gmra.mxu0 %v355_v28  ;;  %877 = vmatprep.subr.mxu1 %v1155_v2 }
  0x84   : > { %878 = vmatpush3.msra.mxu1 %v536_v34 }
  0x85   : > { %879 = vmatprep.subr.mxu1 %v1155_v2 }
  0x86   : > { %880 = vmatpush3.msra.mxu1 %v535_v35 }
  0x87   : > { %881 = vmatprep.subr.mxu1 %v1155_v2 }
  0x88   : > { %882 = vmatpush3.msra.mxu1 %v534_v36 }
  0x89   : > { %883 = vmatprep.subr.mxu1 %v1155_v2 }
  0x8a   : > { %884 = vmatpush3.msra.mxu1 %v533_v37 }
  0x8b   : > { %885 = vmatprep.subr.mxu1 %v1155_v2 }
  0x8c   : > { %886 = vmatpush3.msra.mxu1 %v532_v38 }
  0x8d   : > { %887 = vmatprep.subr.mxu1 %v1155_v2 }
  0x8e   : > { %888 = vmatpush3.msra.mxu1 %v531_v39 }
 0x12d   : > { %v517_v40 = vpop.f32.mrf.mxu1 }
 0x12f   : > { %v856_v41 = vpop.f32.mrf.mxu1 }
 0x143   : > { %v443_v42 = vpop.f32.mrf.mxu0 }
 0x144   : > { %v518_v44 = vadd.f32 %v517_v40, %v443_v42 }
 0x145   : > { %v845_v45 = vpop.f32.mrf.mxu0 }
 0x146   : > { %v528_v46 = vadd.f32 %v764_v43, %v518_v44 }
 0x148   : > { %970 = vtanh.f32 %v528_v46 }
 0x155   : > { %v971_v47 = vpop.eup %970 }
 0x156   : > { %530 = vst [vmem:[#allocation9] sm:$0xff] %v971_v47  ;;  %890 = vmatmul.mubr.f32.vlgmr.msra.gmra.mxu1 %v971_v47 }
 0x157   : > { %1065 = shalt.err (!%p1062_p13)
}
 0x158   : > { %p1488_p5 = pmov %p1487_p1  ;;  %v765_v48 = vld [vmem:[%s1463_s6] ss:$0 sm:$0xff]  ;;  %s767_s14 = sshll.u32 %s1225_s9, 7 }
 0x159   : > { %s639_s20 = sshll.u32 %s1336_s13, 4  ;;  %s1416_s24 = scalar_lea.hbm %s1464_s7, %s767_s14  ;;  %s640_s20 = int_to_ptr.vmem [resolvable:$true] %s639_s20 }
 0x15a   : > { %904 = dma.vmem_to_hbm [thread:$0]  (%p1488_p5), %s651_s5, 128, %s1465_s8, [#allocation10]  }
 0x15b   : > { %s626_s19 = scalar_lea.sflag [#allocation4], %s1322_s3  ;;  %s1076_s15 = scalar_lea.vmem %s640_s20, 128 }
 0x15c   : > { %p1077_p8 = scmp.ne.s32.totalorder %s640_s20, %s1076_s15  ;;  %p1489_p0 = scmp.ne.s32.totalorder %s1479_s16, 0 }
 0x15d   : > { %s1158_s18 = smov [#allocation8]  }
 0x15e   : > { %p1078_p4 = pnand %p1077_p8, %p1489_p0  ;;  %s1080_s5 = sshll.u32 %s1158_s18, 4  ;;  %s1081_s5 = int_to_ptr.vmem [resolvable:$false] %s1080_s5 }
 0x15f   : > { %s1082_s17 = scalar_lea.vmem %s1081_s5, 256  ;;  %p1083_p3 = scmp.lt.s32.totalorder %s640_s20, %s1081_s5 }
 0x160   : > { %p1079_p9 = pneg %p1078_p4  ;;  %p1084_p11 = scmp.lt.s32.totalorder %s1082_s17, %s1076_s15 }
 0x162   : > { %p1085_p1 = por %p1084_p11, %p1083_p3 }
 0x164   : > { %p1086_p2 = pnand %p1085_p1, %p1079_p9 }
 0x216   : > { %v620_v49 = vpop.f32.mrf.mxu1 }
 0x217   : > { %v621_v50 = vadd.f32 %v765_v48, %v620_v49 }
 0x218   : > { %v891_v51 = vpop.f32.mrf.mxu1 }
 0x219   : > { %624 = vst [vmem:[%s1336_s13] sm:$0xff] %v621_v50 }
 0x21a   : > { %1089 = shalt.err (!%p1086_p2)
}
 0x21b   : > { %s1090_s13 = scalar_lea.hbm %s1416_s24, 128  ;;  %s1094_s11 = scalar_lea.hbm %s1464_s7, 1536 }
 0x21c   : > { %p1091_p6 = scmp.ne.s32.totalorder %s1416_s24, %s1090_s13  ;;  %p1095_p10 = scmp.lt.s32.totalorder %s1416_s24, %s1464_s7 }
 0x21d   : > { %p1096_p13 = scmp.lt.s32.totalorder %s1094_s11, %s1090_s13 }
 0x21e   : > { %p1092_p12 = pnand %p1091_p6, %p1489_p0 }
 0x21f   : > { %p1097_p5 = por %p1096_p13, %p1095_p10 }
 0x220   : > { %p1093_p7 = pneg %p1092_p12 }
 0x222   : > { %p1098_p8 = pnand %p1097_p5, %p1093_p7 }
 0x224   : > { %1101 = shalt.err (!%p1098_p8)
}
 0x225   : > { %902 = dma.vmem_to_hbm [thread:$0]  (%p1489_p0), %s640_s20, 128, %s1416_s24, %s626_s19  }
 0x226   : > { %p1490_p4 = scmp.eq.s32.totalorder %s1225_s9, 11 }
 0x228   : > { %1127 = dma.done.wait (%p1490_p4), [#allocation10], 128   ;;  %p1491_p9 = pmov %p1490_p4 }
 0x22a   : > { %1129 = vsyncadd (%p1491_p9), [#allocation10], 4294967168 }
 0x22b PF: > { %p930_p3 = scmp.ge.s32.totalorder %s1148_s30, 2  ;;  %s666_s14 = sand.u32 1, %s1136_s27  }
 0x22c   : > { %p1492_p11 = scmp.ne.s32.totalorder %s1473_s12, 0  ;;  %s667_s21 = scalar_lea.sflag [#allocation4], %s666_s14 }
 0x22e   : > { %p920_p1 = pnand %p930_p3, %p1492_p11 }
 0x230   : > { %p921_p2 = pneg %p920_p1 }
 0x232   : > { %1131 = dma.done.wait (%p921_p2), %s667_s21, 128  }
 0x233   : > { %1133 = vsyncadd (%p921_p2), %s667_s21, 4294967168  ;;  %s1493_s16 = sld [smem:[#allocation15_spill]]  ;;  %p24_p0 = scmp.ge.s32.totalorder %s1276_s10, 14  }
 0x234   : > { %s1494_s27 = smov %s1140_s28  ;;  %s1495_s28 = smov %s1144_s29 }
 0x235   : > { %s1497_s30 = smov %s1276_s10  ;;  %26 = sbr.rel (!%p24_p0) target bundleno = 10 (0xa), region = 113 }
 0x239   : > { %s1496_s29 = smov %s1493_s16 }
 0x23a   :  { %672 = vsyncpa [#allocation3], 1 }
 0x23b   :  { %674 = vsyncpa [#allocation3 + $0x1], 1 }
 0x23c   :  { %675 = vsyncpa [#allocation6], 1 }
 0x23d   :  { %676 = vsyncpa [#allocation4], 1 }
 0x23e   :  { %678 = vsyncpa [#allocation4 + $0x1], 1 }
 0x23f   :  { %679 = vsyncpa [#allocation10], 1 }

</bundles_post_ra>
